<compile_context>
chip_gen: v7x
topology: tpu7x:2x2x1
jax: 0.10.0
libtpu: 0.0.40
codegen_flags: <defaults>
</compile_context>

<pallas_src>
import functools

import jax
import jax.numpy as jnp
from jax.experimental import pallas as pl
from jax.experimental.pallas import tpu as pltpu

H_PAD = 128      # hidden 100 zero-padded to the 128-lane width (per head)
OUT_PAD = 128    # fused output (a_dim + 1) zero-padded to a lane-dense 128 columns


def _round_up(x, m):
    return ((x + m - 1) // m) * m


def _fused_kernel(x_ref, w1_ref, w2_ref, b_ref, out_ref, *, s_dim, hh):
    # x: (tb, s_dim) f32, w1: (s_dim, hh) f32, w2: (hh, OUT_PAD) bf16,
    # b: (1, hh + OUT_PAD) f32 laid out as [b1 | b2].
    x = x_ref[...]
    w1 = w1_ref[...]
    b1 = b_ref[:, :hh]          # lane-aligned static slices (hh is a multiple of 128)
    b2 = b_ref[:, hh:]

    # Layer 1 (policy + value heads fused): K=4 contraction as unrolled VPU FMAs —
    # no MXU push for a 4-deep contraction, no bf16 cast of x, exact f32 math.
    h_pre = b1 + x[:, 0:1] * w1[0:1, :]
    for k in range(1, s_dim):
        h_pre = h_pre + x[:, k:k + 1] * w1[k:k + 1, :]
    # f32 tanh (v5e has no bf16 EUP path); v6e/v7x could run tanh in bf16 for ~2x EUP
    # throughput at large tiles — kept f32 here for portability/accuracy.
    h = jnp.tanh(h_pre)

    # Layer 2 (block-diagonal pi2/v2 fusion): one MXU pass, lane-dense bf16 store.
    out = jnp.dot(h.astype(w2_ref.dtype), w2_ref[...],
                  preferred_element_type=jnp.float32) + b2
    out_ref[...] = out.astype(out_ref.dtype)


def _pick_batch_tile(B):
    if B < 256:
        # Tiny problem: one grid step, everything resident.
        return _round_up(max(B, 8), 8)
    # >=2 (usually 4) parallel steps so both v7x TensorCores get work; cap the tile at
    # 1024 rows — big enough to amortize per-step overhead on single-TC v5e/v6e, and
    # the per-tile VMEM footprint stays far below every chip's scoped default.
    return min(1024, max(128, _round_up(pl.cdiv(B, 4), 8)))


def a3c_net_forward(x, packed):
    """Forward pass of the A3C Net: returns (logits [B, a_dim], values [B, 1])."""
    B, s_dim = x.shape
    hh = packed["w1"].shape[1]
    out_pad = packed["w2"].shape[1]
    a_dim = packed["a_dim"]

    tile = _pick_batch_tile(B)
    grid_b = pl.cdiv(B, tile)
    b_pad = grid_b * tile
    if b_pad != B:
        # Pad batch to a whole number of tiles; padded rows are sliced off below.
        x = jnp.pad(x, ((0, b_pad - B), (0, 0)))

    kernel = functools.partial(_fused_kernel, s_dim=s_dim, hh=hh)

    # TODO(synk): pipeline_mode=pl.Buffered(1) on the grid-invariant w1/w2/b specs would
    # drop their redundant double buffers (~80 KB VMEM); left at defaults for portability.
    fused = pl.pallas_call(
        kernel,
        out_shape=jax.ShapeDtypeStruct((b_pad, out_pad), jnp.bfloat16),
        grid=(grid_b,),
        in_specs=[
            pl.BlockSpec((tile, s_dim), lambda i: (i, 0)),
            pl.BlockSpec((s_dim, hh), lambda i: (0, 0)),
            pl.BlockSpec((hh, out_pad), lambda i: (0, 0)),
            pl.BlockSpec((1, hh + out_pad), lambda i: (0, 0)),
        ],
        out_specs=pl.BlockSpec((tile, out_pad), lambda i: (i, 0)),
        compiler_params=pltpu.CompilerParams(dimension_semantics=("parallel",)),
    )(x, packed["w1"], packed["w2"], packed["b"])

    # Keep this function inside the caller's jit so these slices fuse with the consumer.
    logits = fused[:B, :a_dim].astype(jnp.float32)
    values = fused[:B, a_dim:a_dim + 1].astype(jnp.float32)
    return logits, values


def init_params(key, s_dim, a_dim, hidden=100):
    """Mimics set_init: normal(0, 0.1) weights, zero biases. Weights stored [in, out]."""
    k1, k2, k3, k4 = jax.random.split(key, 4)
    n = lambda k, shape: (0.1 * jax.random.normal(k, shape)).astype(jnp.float32)
    return {
        "w_pi1": n(k1, (s_dim, hidden)), "b_pi1": jnp.zeros((hidden,), jnp.float32),
        "w_pi2": n(k2, (hidden, a_dim)), "b_pi2": jnp.zeros((a_dim,), jnp.float32),
        "w_v1":  n(k3, (s_dim, hidden)), "b_v1":  jnp.zeros((hidden,), jnp.float32),
        "w_v2":  n(k4, (hidden, 1)),     "b_v2":  jnp.zeros((1,), jnp.float32),
    }


def pack_params(p, *, h_pad=H_PAD, out_pad=OUT_PAD):
    """Fuse + zero-pad the four Linear layers into 3 lane-aligned kernel operands
    (done once at init, outside the hot path).  w1 stays f32 (VPU layer-1), w2 is bf16
    (MXU layer-2), biases f32."""
    assert h_pad % 128 == 0 and out_pad % 128 == 0, "padding must stay lane-aligned"
    s_dim, hidden = p["w_pi1"].shape
    a_dim = p["w_pi2"].shape[1]
    assert a_dim + 1 <= out_pad
    hh = 2 * h_pad

    w1 = jnp.zeros((s_dim, hh), jnp.float32)
    w1 = w1.at[:, :hidden].set(p["w_pi1"])
    w1 = w1.at[:, h_pad:h_pad + hidden].set(p["w_v1"])

    w2 = jnp.zeros((hh, out_pad), jnp.float32)
    w2 = w2.at[:hidden, :a_dim].set(p["w_pi2"])
    w2 = w2.at[h_pad:h_pad + hidden, a_dim:a_dim + 1].set(p["w_v2"])

    b = jnp.zeros((1, hh + out_pad), jnp.float32)
    b = b.at[0, :hidden].set(p["b_pi1"])
    b = b.at[0, h_pad:h_pad + hidden].set(p["b_v1"])
    b = b.at[0, hh:hh + a_dim].set(p["b_pi2"])
    b = b.at[0, hh + a_dim:hh + a_dim + 1].set(p["b_v2"])

    return {"w1": w1, "w2": w2.astype(jnp.bfloat16), "b": b, "a_dim": a_dim}


def reference_forward(x, p):
    """Pure-f32 reference with the original (unfused, unpadded) parameters."""
    pi1 = jnp.tanh(x @ p["w_pi1"] + p["b_pi1"])
    logits = pi1 @ p["w_pi2"] + p["b_pi2"]
    v1 = jnp.tanh(x @ p["w_v1"] + p["b_v1"])
    values = v1 @ p["w_v2"] + p["b_v2"]
    return logits, values


# TODO(synk): choose_action / loss_func (softmax sampling, Categorical log_prob) are
# host-side training utilities outside the forward pass and are not ported to Pallas.

if __name__ == "__main__":
    key = jax.random.PRNGKey(0)
    k_x, k_p, k_x2 = jax.random.split(key, 3)

    s_dim, a_dim = 4, 2          # CartPole-style state/action dims
    raw = init_params(k_p, s_dim, a_dim)
    packed = pack_params(raw)

    # jit the whole forward so the output slices fuse with the kernel launch.
    fwd = jax.jit(lambda xs: a3c_net_forward(xs, packed))

    # --- small batch: single-step grid, everything resident -----------------
    B = 8
    x = jax.random.normal(k_x, (B, s_dim), dtype=jnp.float32)
    logits, values = jax.block_until_ready(fwd(x))
    ref_l, ref_v = reference_forward(x, raw)
    assert logits.shape == (B, a_dim) and values.shape == (B, 1)
    assert jnp.allclose(logits, ref_l, atol=3e-2, rtol=3e-2)
    assert jnp.allclose(values, ref_v, atol=3e-2, rtol=3e-2)

    # --- larger, non-tile-multiple batch: padded cdiv grid, >=2 parallel steps
    B2 = 300
    x2 = jax.random.normal(k_x2, (B2, s_dim), dtype=jnp.float32)
    logits2, values2 = jax.block_until_ready(fwd(x2))
    ref_l2, ref_v2 = reference_forward(x2, raw)
    assert logits2.shape == (B2, a_dim) and values2.shape == (B2, 1)
    assert jnp.allclose(logits2, ref_l2, atol=3e-2, rtol=3e-2)
    assert jnp.allclose(values2, ref_v2, atol=3e-2, rtol=3e-2)

    print("KERNEL_OK")
</pallas_src>

<mosaic_0001>
module attributes {stable_mosaic.version = 11 : i64} {
  func.func @_fused_kernel(%arg0: i32, %arg1: memref<8x4xf32, #tpu.memory_space<vmem>>, %arg2: memref<4x256xf32, #tpu.memory_space<vmem>>, %arg3: memref<256x128xbf16, #tpu.memory_space<vmem>>, %arg4: memref<1x384xf32, #tpu.memory_space<vmem>>, %arg5: memref<8x128xbf16, #tpu.memory_space<vmem>>) attributes {dimension_semantics = [#tpu.dimension_semantics<parallel>], iteration_bounds = array<i64: 1>, scalar_prefetch = 0 : i64, scratch_operands = 0 : i64, tpu.core_type = #tpu.core_type<tc>, window_params = [{transform_indices = @transform_0, window_bounds = array<i64: 8, 4>}, {pipeline_mode = #tpu.pipeline_mode<synchronous>, transform_indices = @transform_1, window_bounds = array<i64: 4, 256>}, {pipeline_mode = #tpu.pipeline_mode<synchronous>, transform_indices = @transform_2, window_bounds = array<i64: 256, 128>}, {pipeline_mode = #tpu.pipeline_mode<synchronous>, transform_indices = @transform_3, window_bounds = array<i64: 1, 384>}, {transform_indices = @transform_4, window_bounds = array<i64: 8, 128>}]} {
    %c0 = arith.constant 0 : index
    %c0_0 = arith.constant 0 : index
    %0 = vector.load %arg1[%c0, %c0_0] : memref<8x4xf32, #tpu.memory_space<vmem>>, vector<8x4xf32>
    %c0_1 = arith.constant 0 : index
    %c0_2 = arith.constant 0 : index
    %1 = vector.load %arg2[%c0_1, %c0_2] : memref<4x256xf32, #tpu.memory_space<vmem>>, vector<4x256xf32>
    %c0_3 = arith.constant 0 : index
    %c0_4 = arith.constant 0 : index
    %2 = vector.load %arg4[%c0_3, %c0_4] : memref<1x384xf32, #tpu.memory_space<vmem>>, vector<1x256xf32>
    %c0_5 = arith.constant 0 : index
    %c256 = arith.constant 256 : index
    %3 = vector.load %arg4[%c0_5, %c256] : memref<1x384xf32, #tpu.memory_space<vmem>>, vector<1x128xf32>
    %4 = vector.extract_strided_slice %0 {offsets = [0, 0], sizes = [8, 1], strides = [1, 1]} : vector<8x4xf32> to vector<8x1xf32>
    %5 = vector.extract_strided_slice %1 {offsets = [0, 0], sizes = [1, 256], strides = [1, 1]} : vector<4x256xf32> to vector<1x256xf32>
    %6 = vector.broadcast %4 : vector<8x1xf32> to vector<8x256xf32>
    %7 = vector.broadcast %5 : vector<1x256xf32> to vector<8x256xf32>
    %8 = arith.mulf %6, %7 : vector<8x256xf32>
    %9 = vector.broadcast %2 : vector<1x256xf32> to vector<8x256xf32>
    %10 = arith.addf %9, %8 : vector<8x256xf32>
    %11 = vector.extract_strided_slice %0 {offsets = [0, 1], sizes = [8, 1], strides = [1, 1]} : vector<8x4xf32> to vector<8x1xf32>
    %12 = vector.extract_strided_slice %1 {offsets = [1, 0], sizes = [1, 256], strides = [1, 1]} : vector<4x256xf32> to vector<1x256xf32>
    %13 = vector.broadcast %11 : vector<8x1xf32> to vector<8x256xf32>
    %14 = vector.broadcast %12 : vector<1x256xf32> to vector<8x256xf32>
    %15 = arith.mulf %13, %14 : vector<8x256xf32>
    %16 = arith.addf %10, %15 : vector<8x256xf32>
    %17 = vector.extract_strided_slice %0 {offsets = [0, 2], sizes = [8, 1], strides = [1, 1]} : vector<8x4xf32> to vector<8x1xf32>
    %18 = vector.extract_strided_slice %1 {offsets = [2, 0], sizes = [1, 256], strides = [1, 1]} : vector<4x256xf32> to vector<1x256xf32>
    %19 = vector.broadcast %17 : vector<8x1xf32> to vector<8x256xf32>
    %20 = vector.broadcast %18 : vector<1x256xf32> to vector<8x256xf32>
    %21 = arith.mulf %19, %20 : vector<8x256xf32>
    %22 = arith.addf %16, %21 : vector<8x256xf32>
    %23 = vector.extract_strided_slice %0 {offsets = [0, 3], sizes = [8, 1], strides = [1, 1]} : vector<8x4xf32> to vector<8x1xf32>
    %24 = vector.extract_strided_slice %1 {offsets = [3, 0], sizes = [1, 256], strides = [1, 1]} : vector<4x256xf32> to vector<1x256xf32>
    %25 = vector.broadcast %23 : vector<8x1xf32> to vector<8x256xf32>
    %26 = vector.broadcast %24 : vector<1x256xf32> to vector<8x256xf32>
    %27 = arith.mulf %25, %26 : vector<8x256xf32>
    %28 = arith.addf %22, %27 : vector<8x256xf32>
    %29 = math.tanh %28 : vector<8x256xf32>
    %30 = arith.truncf %29 : vector<8x256xf32> to vector<8x256xbf16>
    %c0_6 = arith.constant 0 : index
    %c0_7 = arith.constant 0 : index
    %31 = vector.load %arg3[%c0_6, %c0_7] : memref<256x128xbf16, #tpu.memory_space<vmem>>, vector<256x128xbf16>
    %cst = arith.constant dense<0.000000e+00> : vector<8x128xf32>
    %32 = tpu.matmul %30, %31, %cst {dimension_numbers = #tpu.dot_dimension_numbers<[1], [0], [0], [1], [0, 0, 1, 1], [], []>} : vector<8x256xbf16>, vector<256x128xbf16>, vector<8x128xf32> -> vector<8x128xf32>
    %33 = vector.broadcast %3 : vector<1x128xf32> to vector<8x128xf32>
    %34 = arith.addf %32, %33 : vector<8x128xf32>
    %35 = arith.truncf %34 : vector<8x128xf32> to vector<8x128xbf16>
    %c0_8 = arith.constant 0 : index
    %c0_9 = arith.constant 0 : index
    %36 = vector.load %arg5[%c0_8, %c0_9] : memref<8x128xbf16, #tpu.memory_space<vmem>>, vector<8x128xbf16>
    tpu.vector_store %arg5[%c0_8, %c0_9], %35 {strides = array<i32>} : memref<8x128xbf16, #tpu.memory_space<vmem>>, vector<8x128xbf16>,
    return
  }
  func.func @transform_0(%arg0: i32) -> (i32, i32) {
    %c0_i32 = arith.constant 0 : i32
    %c0_i32_0 = arith.constant 0 : i32
    return %arg0, %c0_i32 : i32, i32
  }
  func.func @transform_1(%arg0: i32) -> (i32, i32) {
    %c0_i32 = arith.constant 0 : i32
    %c0_i32_0 = arith.constant 0 : i32
    %c0_i32_1 = arith.constant 0 : i32
    return %c0_i32, %c0_i32_0 : i32, i32
  }
  func.func @transform_2(%arg0: i32) -> (i32, i32) {
    %c0_i32 = arith.constant 0 : i32
    %c0_i32_0 = arith.constant 0 : i32
    %c0_i32_1 = arith.constant 0 : i32
    return %c0_i32, %c0_i32_0 : i32, i32
  }
  func.func @transform_3(%arg0: i32) -> (i32, i32) {
    %c0_i32 = arith.constant 0 : i32
    %c0_i32_0 = arith.constant 0 : i32
    %c0_i32_1 = arith.constant 0 : i32
    return %c0_i32, %c0_i32_0 : i32, i32
  }
  func.func @transform_4(%arg0: i32) -> (i32, i32) {
    %c0_i32 = arith.constant 0 : i32
    %c0_i32_0 = arith.constant 0 : i32
    return %arg0, %c0_i32 : i32, i32
  }
}

</mosaic_0001>

<bundles_post_ra>
// kernel: _lambda_.1
= control target key start
LH: loop header
LB: loop body
LE: loop exit
PB: predicated region body
PF: predicated region fallthrough
CT: control target
= control target key end

     0   :  { %9 = vsyncpa [#allocation3], 0  ;;  %s433_s15 = smov [#allocation2]   ;;  %s492_s0 = inlined_call_operand.vmem [shape: f32[8,4], index: 0, kind: input, shape index: {}]   ;;  %s493_s1 = inlined_call_operand.vmem [shape: f32[4,256], index: 1, kind: input, shape index: {}]   ;;  %s494_s2 = inlined_call_operand.hbm [shape: bf16[256,128], index: 2, kind: input, shape index: {}]   ;;  %s495_s3 = inlined_call_operand.vmem [shape: f32[1,384], index: 3, kind: input, shape index: {}]   ;;  %s496_s4 = inlined_call_operand.vmem [shape: bf16[8,128], index: 4, kind: output, shape index: {}]  }
   0x1   :  { %s19_s16 = sshll.u32 %s433_s15, 4  ;;  %s409_s19 = scalar_lea.hbm %s494_s2, 2048  ;;  %s20_s16 = int_to_ptr.vmem [resolvable:$true] %s19_s16 }
   0x2   :  { %p410_p0 = scmp.ne.s32.totalorder %s494_s2, %s409_s19  ;;  %p413_p1 = scmp.lt.u32.totalorder %s409_s19, %s494_s2 }
   0x4   :  { %p415_p2 = pnand %p413_p1, %p410_p0 }
   0x6   :  { %418 = shalt.err (!%p415_p2)
}
   0x7   :  { %s419_s24 = scalar_lea.vmem %s20_s16, 2048  ;;  %p424_p4 = scmp.lt.s32.totalorder %s20_s16, %s20_s16 }
   0x8   :  { %p420_p3 = scmp.ne.s32.totalorder %s20_s16, %s419_s24  ;;  %p425_p5 = scmp.lt.s32.totalorder %s419_s24, %s419_s24 }
   0xa   :  { %p426_p6 = por %p425_p5, %p424_p4 }
   0xc   :  { %p427_p7 = pnand %p426_p6, %p420_p3 }
   0xe   :  { %430 = shalt.err (!%p427_p7)
}
   0xf   :  { %s434_s25 = smov 64   ;;  %s435_s26 = smov 4  }
  0x10   :  { %25 = dma.hbm_to_vmem [thread:$0]  %s494_s2, 2048, %s20_s16, [#allocation3], %s434_s25, %s434_s25, %s435_s26  }
  0x11   :  { %431 = dma.done.wait [#allocation3], 2048  }
  0x12   :  { %432 = vsyncadd [#allocation3], 4294965248  ;;  %v436_v0 = vmov 0   ;;  %v437_v1 = vmov 2   ;;  %v32_v2 = vld [vmem:[%s492_s0] sm:$0xff]  ;;  %v391_v5 = vld [vmem:[#allocation2 + $0x48] sm:$0xff]   ;;  %v42_v21 = vlaneseq }
  0x13   :  { %384 = vset.pattern.permute.xlu0 %v436_v0  ;;  %386 = vset.pattern.permute.xlu1 %v437_v1  ;;  %v389_v3 = vld [vmem:[#allocation2 + $0x40] sm:$0xff]   ;;  %v392_v6 = vld [vmem:[#allocation2 + $0x8] sm:$0xff]   ;;  %v438_v7 = vmov 1   ;;  %v439_v8 = vmov 3   ;;  %v393_v9 = vld [vmem:[#allocation2 + $0x50] sm:$0xff]  }
  0x14   :  { %38 = vperm.xlu0 %384, %v32_v2   ;;  %102 = vperm.xlu1 %386, %v32_v2   ;;  %v390_v4 = vld [vmem:[#allocation2] sm:$0xff]   ;;  %v394_v10 = vld [vmem:[#allocation2 + $0x10] sm:$0xff]   ;;  %v395_v11 = vld [vmem:[#allocation2 + $0x58] sm:$0xff]   ;;  %v43_v22 = vshrl.u32 %v42_v21, 7 }
  0x15   :  { %355 = vmatprep.subr.bf16.mxu0 %v389_v3  ;;  %v396_v12 = vld [vmem:[#allocation2 + $0x18] sm:$0xff]   ;;  %v397_v13 = vld [vmem:[#allocation2 + $0x60] sm:$0xff]   ;;  %v399_v15 = vld [vmem:[#allocation2 + $0x68] sm:$0xff]  }
  0x16   :  { %356 = vmatpush3.bf16.msra.mxu0 %v390_v4  ;;  %v398_v14 = vld [vmem:[#allocation2 + $0x20] sm:$0xff]   ;;  %v400_v16 = vld [vmem:[#allocation2 + $0x28] sm:$0xff]   ;;  %v401_v17 = vld [vmem:[#allocation2 + $0x70] sm:$0xff]   ;;  %v44_v23 = vsub.s32 0, %v43_v22  ;;  %v48_v24 = vsub.s32 4, %v43_v22  ;;  %v69_v28 = vsub.s32 1, %v43_v22 }
  0x17   :  { %357 = vmatprep.subr.bf16.mxu0 %v391_v5  ;;  %v402_v18 = vld [vmem:[#allocation2 + $0x30] sm:$0xff]   ;;  %v403_v19 = vld [vmem:[#allocation2 + $0x78] sm:$0xff]   ;;  %v33_v25 = vld [vmem:[%s493_s1] sm:$0xff]  ;;  %v85_v29 = vsub.s32 5, %v43_v22  ;;  %v107_v30 = vsub.s32 2, %v43_v22  ;;  %v111_v31 = vsub.s32 6, %v43_v22 }
  0x18   :  { %385 = vset.pattern.permute.xlu0 %v438_v7  ;;  %387 = vset.pattern.permute.xlu1 %v439_v8  ;;  %v404_v20 = vld [vmem:[#allocation2 + $0x38] sm:$0xff]   ;;  %v45_v26 = vrot.slane %v33_v25, %v44_v23  ;;  %v49_v27 = vrot.slane %v33_v25, %v48_v24  ;;  %v133_v32 = vsub.s32 3, %v43_v22  ;;  %v137_v33 = vsub.s32 7, %v43_v22  ;;  %v34_v34 = vld [vmem:[%s495_s3] sm:$0x3] }
  0x19   :  { %76 = vperm.xlu0 %385, %v32_v2   ;;  %128 = vperm.xlu1 %387, %v32_v2   ;;  %v82_v37 = vrot.slane %v33_v25, %v69_v28  ;;  %v86_v38 = vrot.slane %v33_v25, %v85_v29  ;;  %v108_v39 = vrot.slane %v33_v25, %v107_v30 }
  0x1a   :  { %358 = vmatpush3.bf16.msra.mxu0 %v392_v6  ;;  %v55_v35 = vrot.slane %v45_v26, %v44_v23  ;;  %v59_v36 = vrot.slane %v49_v27, %v44_v23  ;;  %v112_v40 = vrot.slane %v33_v25, %v111_v31  ;;  %v134_v43 = vrot.slane %v33_v25, %v133_v32 }
  0x1b   :  { %359 = vmatprep.subr.bf16.mxu0 %v393_v9  ;;  %v138_v44 = vrot.slane %v33_v25, %v137_v33  ;;  %v66_v45 = vrot.slane %v34_v34, %v44_v23  ;;  %v70_v46 = vrot.slane %v34_v34, %v69_v28  ;;  %v92_v49 = vrot.slane %v82_v37, %v69_v28 }
  0x1c   :  { %v96_v50 = vrot.slane %v86_v38, %v69_v28  ;;  %v118_v51 = vrot.slane %v108_v39, %v107_v30  ;;  %v122_v52 = vrot.slane %v112_v40, %v107_v30  ;;  %v144_v53 = vrot.slane %v134_v43, %v133_v32 }
  0x1d   :  { %388 = vset.pattern.permute.xlu0 %v439_v8  ;;  %v148_v54 = vrot.slane %v138_v44, %v133_v32 }
  0x1e   :  { %360 = vmatpush3.bf16.msra.mxu0 %v394_v10 }
  0x1f   :  { %361 = vmatprep.subr.bf16.mxu0 %v395_v11 }
  0x22   :  { %362 = vmatpush3.bf16.msra.mxu0 %v396_v12  ;;  %v338_v12 = vld [vmem:[%s495_s3 + $0x2] ss:$0 sm:$0xff] }
  0x23   :  { %363 = vmatprep.subr.bf16.mxu0 %v397_v13 }
  0x26   :  { %364 = vmatpush3.bf16.msra.mxu0 %v398_v14 }
  0x27   :  { %365 = vmatprep.subr.bf16.mxu0 %v399_v15 }
  0x2a   :  { %366 = vmatpush3.bf16.msra.mxu0 %v400_v16 }
  0x2b   :  { %367 = vmatprep.subr.bf16.mxu0 %v401_v17 }
  0x2e   :  { %368 = vmatpush3.bf16.msra.mxu0 %v402_v18 }
  0x2f   :  { %369 = vmatprep.subr.bf16.mxu0 %v403_v19 }
  0x32   :  { %370 = vmatpush3.bf16.msra.mxu0 %v404_v20 }
  0x93   :  { %v39_v41 = vpop.permute.xlu0 %38  ;;  %v103_v42 = vpop.permute.xlu1 %102 }
  0x94   :  { %v60_v47 = vmul.f32 %v55_v35, %v39_v41  ;;  %v61_v48 = vmul.f32 %v59_v36, %v39_v41  ;;  %v123_v61 = vmul.f32 %v118_v51, %v103_v42  ;;  %v124_v62 = vmul.f32 %v122_v52, %v103_v42 }
  0x96   :  { %v73_v57 = vadd.f32 %v66_v45, %v60_v47  ;;  %v74_v58 = vadd.f32 %v70_v46, %v61_v48 }
  0x98   :  { %v77_v55 = vpop.permute.xlu0 %76  ;;  %v129_v56 = vpop.permute.xlu1 %128 }
  0x99   :  { %v97_v59 = vmul.f32 %v92_v49, %v77_v55  ;;  %v98_v60 = vmul.f32 %v96_v50, %v77_v55  ;;  %v149_v1 = vmul.f32 %v144_v53, %v129_v56  ;;  %v150_v2 = vmul.f32 %v148_v54, %v129_v56 }
  0x9b   :  { %v99_v63 = vadd.f32 %v97_v59, %v73_v57  ;;  %v100_v0 = vadd.f32 %v98_v60, %v74_v58 }
  0x9d   :  { %v125_v3 = vadd.f32 %v123_v61, %v99_v63  ;;  %v126_v4 = vadd.f32 %v124_v62, %v100_v0 }
  0x9f   :  { %v151_v5 = vadd.f32 %v149_v1, %v125_v3  ;;  %v152_v6 = vadd.f32 %v150_v2, %v126_v4 }
  0xa1   :  { %405 = vtanh.f32 %v151_v5 }
  0xa2   :  { %407 = vtanh.f32 %v152_v6 }
  0xab   :  { %v406_v7 = vpop.eup %405 }
  0xac   :  { %v408_v8 = vpop.eup %407  ;;  %v155_v9 = vpack.c.bf16 %v406_v7, %v406_v7 }
  0xad   :  { %v156_v10 = vpack.c.bf16 %v408_v8, %v408_v8 }
  0xaf   :  { %323 = vmatprep.mubr.bf16.mxu0 %v156_v10 }
  0xb0   :  { %324 = vmatmul.mubr.bf16.vlgmr.msra.gmra.mrb[0].mxu0 %v155_v9 }
 0x183   :  { %v371_v11 = vpop.f32.mrb[0].mxu0 }
 0x184   :  { %v372_v13 = vpop.f32.mrb[1].mxu0 }
 0x185   :  { %v373_v14 = vadd.f32 %v372_v13, %v371_v11  ;;  %v374_v15 = vpop.f32.mrb[2].mxu0 }
 0x186   :  { %v375_v16 = vpop.f32.mrb[3].mxu0 }
 0x187   :  { %v326_v17 = vadd.f32 %v373_v14, %v338_v12 }
 0x189   :  { %v331_v18 = vpack.c.bf16 %v326_v17, %v326_v17 }
 0x18b   :  { %332 = vst [vmem:[%s496_s4] sm:$0xf] %v331_v18 }
 0x18c   :  { %337 = vsyncpa [#allocation3], 1 }

</bundles_post_ra>
